<compile_context>
chip_gen: v5e
topology: v5e:2x2
jax: 0.10.0
libtpu: 0.0.40
codegen_flags: <defaults>
</compile_context>

<pallas_src>
import math

import jax
import jax.numpy as jnp
from jax.experimental import pallas as pl
from jax.experimental.pallas import tpu as pltpu


# ----------------------------- Pallas kernel ------------------------------

def _linear_bias_kernel(x_ref, w_ref, b_ref, o_ref):
    # x_ref: (tm, K), w_ref: (K, N), b_ref: (1, N), o_ref: (tm, N)
    acc = jnp.dot(x_ref[...], w_ref[...], preferred_element_type=jnp.float32)
    o_ref[...] = (acc + b_ref[...]).astype(o_ref.dtype)


def _round_up(x, m):
    return (x + m - 1) // m * m


def linear_pallas(x, w, b, *, max_tm=256):
    """out[M, N] = x[M, K] @ w[K, N] + b[N], rows tiled on a parallel grid."""
    M, K = x.shape
    Kw, N = w.shape
    assert K == Kw and b.shape == (N,)
    tm = min(max_tm, _round_up(M, 8))        # batch-independent VMEM footprint
    Mp = _round_up(M, tm)
    if Mp != M:                              # pad rows so M % tm == 0
        x = jnp.pad(x, ((0, Mp - M), (0, 0)))
    out = pl.pallas_call(
        _linear_bias_kernel,
        out_shape=jax.ShapeDtypeStruct((Mp, N), jnp.float32),
        grid_spec=pltpu.PrefetchScalarGridSpec(
            num_scalar_prefetch=0,
            grid=(Mp // tm,),
            in_specs=[
                pl.BlockSpec((tm, K), lambda i: (i, 0)),   # activation tile
                pl.BlockSpec((K, N), lambda i: (0, 0)),    # full (tiny) weight
                pl.BlockSpec((1, N), lambda i: (0, 0)),    # bias
            ],
            out_specs=pl.BlockSpec((tm, N), lambda i: (i, 0)),
        ),
        compiler_params=pltpu.CompilerParams(
            dimension_semantics=("parallel",),
        ),
    )(x, w, b.reshape(1, N))
    return out[:M]


# ------------------------------- model glue --------------------------------

def init_params(key):
    # nn.Linear(5, 2), PyTorch-style uniform(-1/sqrt(in), 1/sqrt(in)) init.
    in_f, out_f = 5, 2
    kw, kb = jax.random.split(key)
    bound = 1.0 / math.sqrt(in_f)
    w = jax.random.uniform(kw, (out_f, in_f), jnp.float32, -bound, bound)
    b = jax.random.uniform(kb, (out_f,), jnp.float32, -bound, bound)
    return {"w": w, "b": b}


def toy_model_forward(params, inputs):
    x = inputs.reshape(-1, 5).astype(jnp.float32)       # inputs.view(-1, 5)
    # PyTorch Linear stores W as (out_features, in_features); kernel wants (K, N).
    return linear_pallas(x, params["w"].T, params["b"])


if __name__ == "__main__":
    key = jax.random.PRNGKey(0)
    pkey, xkey = jax.random.split(key)
    params = init_params(pkey)

    # Small deterministic input; view(-1, 5) -> (8, 5) rows.
    x = jax.random.normal(xkey, (2, 4, 5), jnp.float32)

    out = jax.jit(toy_model_forward)(params, x)
    out = jax.block_until_ready(out)
    assert out.shape == (8, 2) and out.dtype == jnp.float32

    # Sanity check against plain-XLA reference (loose tol: MXU default precision).
    ref = x.reshape(-1, 5) @ params["w"].T + params["b"]
    assert jnp.allclose(out, ref, atol=5e-2, rtol=5e-2)

    print("KERNEL_OK")
</pallas_src>

<mosaic_0001>
module attributes {stable_mosaic.version = 11 : i64} {
  func.func @_linear_bias_kernel(%arg0: i32, %arg1: memref<8x5xf32, #tpu.memory_space<vmem>>, %arg2: memref<5x2xf32, #tpu.memory_space<vmem>>, %arg3: memref<1x2xf32, #tpu.memory_space<vmem>>, %arg4: memref<8x2xf32, #tpu.memory_space<vmem>>) attributes {dimension_semantics = [#tpu.dimension_semantics<parallel>], iteration_bounds = array<i64: 1>, scalar_prefetch = 0 : i64, scratch_operands = 0 : i64, tpu.core_type = #tpu.core_type<tc>, window_params = [{transform_indices = @transform_0, window_bounds = array<i64: 8, 5>}, {pipeline_mode = #tpu.pipeline_mode<synchronous>, transform_indices = @transform_1, window_bounds = array<i64: 5, 2>}, {pipeline_mode = #tpu.pipeline_mode<synchronous>, transform_indices = @transform_2, window_bounds = array<i64: 1, 2>}, {transform_indices = @transform_3, window_bounds = array<i64: 8, 2>}]} {
    %c0 = arith.constant 0 : index
    %c0_0 = arith.constant 0 : index
    %0 = vector.load %arg1[%c0, %c0_0] : memref<8x5xf32, #tpu.memory_space<vmem>>, vector<8x5xf32>
    %c0_1 = arith.constant 0 : index
    %c0_2 = arith.constant 0 : index
    %1 = vector.load %arg2[%c0_1, %c0_2] : memref<5x2xf32, #tpu.memory_space<vmem>>, vector<5x2xf32>
    %cst = arith.constant dense<0.000000e+00> : vector<8x2xf32>
    %2 = tpu.matmul %0, %1, %cst {dimension_numbers = #tpu.dot_dimension_numbers<[1], [0], [0], [1], [0, 0, 1, 1], [], []>} : vector<8x5xf32>, vector<5x2xf32>, vector<8x2xf32> -> vector<8x2xf32>
    %c0_3 = arith.constant 0 : index
    %c0_4 = arith.constant 0 : index
    %3 = vector.load %arg3[%c0_3, %c0_4] : memref<1x2xf32, #tpu.memory_space<vmem>>, vector<1x2xf32>
    %4 = vector.broadcast %3 : vector<1x2xf32> to vector<8x2xf32>
    %5 = arith.addf %2, %4 : vector<8x2xf32>
    %c0_5 = arith.constant 0 : index
    %c0_6 = arith.constant 0 : index
    %6 = vector.load %arg4[%c0_5, %c0_6] : memref<8x2xf32, #tpu.memory_space<vmem>>, vector<8x2xf32>
    tpu.vector_store %arg4[%c0_5, %c0_6], %5 {strides = array<i32>} : memref<8x2xf32, #tpu.memory_space<vmem>>, vector<8x2xf32>,
    return
  }
  func.func @transform_0(%arg0: i32) -> (i32, i32) {
    %c0_i32 = arith.constant 0 : i32
    %c0_i32_0 = arith.constant 0 : i32
    return %arg0, %c0_i32 : i32, i32
  }
  func.func @transform_1(%arg0: i32) -> (i32, i32) {
    %c0_i32 = arith.constant 0 : i32
    %c0_i32_0 = arith.constant 0 : i32
    %c0_i32_1 = arith.constant 0 : i32
    return %c0_i32, %c0_i32_0 : i32, i32
  }
  func.func @transform_2(%arg0: i32) -> (i32, i32) {
    %c0_i32 = arith.constant 0 : i32
    %c0_i32_0 = arith.constant 0 : i32
    %c0_i32_1 = arith.constant 0 : i32
    return %c0_i32, %c0_i32_0 : i32, i32
  }
  func.func @transform_3(%arg0: i32) -> (i32, i32) {
    %c0_i32 = arith.constant 0 : i32
    %c0_i32_0 = arith.constant 0 : i32
    return %arg0, %c0_i32 : i32, i32
  }
}

</mosaic_0001>

<bundles_post_ra>
// kernel: toy_model_forward.1
= control target key start
LH: loop header
LB: loop body
LE: loop exit
PB: predicated region body
PF: predicated region fallthrough
CT: control target
= control target key end

     0   :  { %vm24_vm0 = vcmask 1044480   ;;  %vm20_vm1 = vcmask 39936   ;;  %vm48_vm2 = vcmask 15360   ;;  %s89_s1 = inlined_call_operand.vmem [shape: f32[5,2], index: 1, kind: input, shape index: {}]   ;;  %s90_s0 = inlined_call_operand.vmem [shape: f32[8,5], index: 0, kind: input, shape index: {}]   ;;  %s91_s2 = inlined_call_operand.vmem [shape: f32[1,2], index: 2, kind: input, shape index: {}]   ;;  %s92_s3 = inlined_call_operand.vmem [shape: f32[8,2], index: 3, kind: output, shape index: {}]  }
   0x1   :  { %v15_v0 = vld [vmem:[%s89_s1] sm:$0x1f] }
   0x2   :  { %v14_v1 = vld [vmem:[%s90_s0] sm:$0xff]  ;;  %54 = vmatpush.msk.msra.mxu0 %vm24_vm0, %v15_v0 }
   0x3   :  { %55 = vmatmul.msk.f32.vlgmr.msra.gmra.mxu0 %vm20_vm1, %v14_v1  ;;  %v56_v2 = vld [vmem:[%s91_s2] ss:$0 sm:$0xff] }
  0x80   :  { %v45_v3 = vpop.f32.mrf.mxu0 }
  0x81   :  { %v46_v4 = vadd.f32 %v56_v2, %v45_v3 }
  0x83   :  { %49 = vst.msk [vmem:[%s92_s3] sm:$0xff] %vm48_vm2, %v46_v4 }

</bundles_post_ra>
